<compile_context>
chip_gen: v5e
topology: v5e:2x2
jax: 0.10.0
libtpu: 0.0.40
codegen_flags: <defaults>
</compile_context>

<pallas_src>
import jax
import jax.numpy as jnp
from jax import lax
from jax.experimental import pallas as pl
from jax.experimental.pallas import tpu as pltpu

# Synthetic cardinalities (small, TPU-friendly stand-ins for the ogbn-mag sizes)
T = 8        # topic cardinality
I = 8        # institute cardinality
A = 128      # author cardinality
C = 128      # citation cardinality
F = 128      # fields cardinality
P = 10       # papers; the PyTorch forward() loops `for i in range(10)`
PPAD = 16    # papers padded to a full bf16 sublane tile
LANES = 128
KTOT = A + C + F     # 384: concatenated likelihood width (three 128-lane groups)


def bp_kernel(adj_cat_ref,        # [PPAD, 384] f32: paper->(author|citation|fields) incidence
              rhs_ref,            # [384, 128] bf16: block child->topic tables, topics in lanes 0:8
              belief_ref,         # [PPAD, 128] f32 output
              pred_ref):          # [PPAD, 128] int32 output
    r = adj_cat_ref[...]                                            # [16, 384] f32

    # ---- closed-form likelihood recurrence (replaces the serial 16-step loop) ----
    # per-child, per-paper row sums (one cross-lane reduction per child)
    s_a = jnp.sum(r[:, 0:A], axis=-1, keepdims=True)                # [16, 1]
    s_c = jnp.sum(r[:, A:A + C], axis=-1, keepdims=True)
    s_f = jnp.sum(r[:, A + C:], axis=-1, keepdims=True)
    s_cat = jnp.concatenate([jnp.broadcast_to(s_a, (PPAD, LANES)),
                             jnp.broadcast_to(s_c, (PPAD, LANES)),
                             jnp.broadcast_to(s_f, (PPAD, LANES))], axis=-1)

    # d_0 = 128 + s_0 (initial likelihood is ones(128)), d_i = 1 + s_i otherwise.
    row = lax.broadcasted_iota(jnp.int32, (PPAD, KTOT), 0)
    d_cat = s_cat + jnp.where(row == 0, float(LANES), 1.0)          # [16, 384], >= 1
    logd = jnp.log(d_cat)

    # lower-triangular prefix operator W (built from iotas, no extra input DMA)
    ri = lax.broadcasted_iota(jnp.int32, (PPAD, PPAD), 0)
    ci = lax.broadcasted_iota(jnp.int32, (PPAD, PPAD), 1)
    W = (ri >= ci).astype(jnp.float32)                              # [16, 16]

    # prefix products p_i = prod_{j<=i} d_j via one tiny f32 MXU matmul in log space
    logp = jnp.dot(W, logd, preferred_element_type=jnp.float32)     # [16, 384] inclusive
    p_prev = jnp.exp(logp - logd)                                   # prod_{j<i} d_j (row 0 -> 1)
    inv_p = jnp.exp(-logp)                                          # exact-enough 1/p_i

    # lik_i = (1 + sum_{j<=i} r_j * p_{j-1}) / p_i ; cumsum over papers via W matmul
    csum = jnp.dot(W, r * p_prev, preferred_element_type=jnp.float32)
    lik = (1.0 + csum) * inv_p                                      # [16, 384] f32
    lik_bf = lik.astype(jnp.bfloat16)

    # ---- child -> topic messages: three lane-aligned bf16 MXU matmuls ----
    # RHS block rows 0:128 / 128:256 / 256:384 hold m_auth / (cpt_cit^T * prior) /
    # cpt_fld^T in lanes 0:8 (lanes 8:128 zero), so every message already sits on
    # lanes 0:8 and lanes >= 8 of the product are exactly zero.
    rhs = rhs_ref[...]                                              # [384, 128] bf16
    m_auth = jnp.dot(lik_bf[:, 0:A], rhs[0:A, :],
                     preferred_element_type=jnp.float32)            # [16, 128]
    m_cit = jnp.dot(lik_bf[:, A:A + C], rhs[A:A + C, :],
                    preferred_element_type=jnp.float32)             # topic prior folded in
    m_fld = jnp.dot(lik_bf[:, A + C:], rhs[A + C:, :],
                    preferred_element_type=jnp.float32)

    # ---- topic.get_belief(): product of child messages (* prior, pre-folded), normalized ----
    unnorm = m_auth * m_cit * m_fld                                 # [16, 128], zero past T
    denom = jnp.sum(unnorm, axis=-1, keepdims=True)                 # > 0 on every row
    belief = unnorm * pl.reciprocal(denom, approx=True)
    belief_ref[...] = belief

    # ---- pred = argmax over topics (first-max tie-break, matches np.argmax) ----
    ids = lax.broadcasted_iota(jnp.int32, (PPAD, LANES), 1)
    maxv = jnp.max(belief, axis=-1, keepdims=True)
    cand = jnp.where(belief == maxv, ids, LANES)
    pred = jnp.min(cand, axis=-1, keepdims=True)                    # [16, 1] int32
    pred_ref[...] = jnp.broadcast_to(pred, (PPAD, LANES))


@jax.jit
def belief_propagation(adj_cat_pad, rhs_bf16):
    vmem = pl.BlockSpec(memory_space=pltpu.MemorySpace.VMEM)
    cost = pl.CostEstimate(
        flops=2 * PPAD * PPAD * KTOT * 2        # two prefix matmuls (f32)
              + 2 * PPAD * LANES * LANES * 3    # three message matmuls (bf16)
              + 20 * PPAD * KTOT,               # elementwise
        transcendentals=3 * PPAD * KTOT + PPAD,
        bytes_accessed=(PPAD * KTOT * 4 + KTOT * LANES * 2 + 2 * PPAD * LANES * 4))
    beliefs_pad, pred_pad = pl.pallas_call(
        bp_kernel,
        out_shape=(jax.ShapeDtypeStruct((PPAD, LANES), jnp.float32),
                   jax.ShapeDtypeStruct((PPAD, LANES), jnp.int32)),
        in_specs=[vmem, vmem],
        out_specs=(vmem, vmem),
        cost_estimate=cost,
    )(adj_cat_pad, rhs_bf16)
    return beliefs_pad[:P, :T], pred_pad[:P, 0]


if __name__ == "__main__":
    key = jax.random.PRNGKey(0)
    ks = jax.random.split(key, 8)

    # Synthetic paper -> {author, field, citation} binary incidence
    # (stand-in for the sparse rows of adj_t_dict used in forward()).
    adj_pa = (jax.random.uniform(ks[0], (P, A)) < 0.1).astype(jnp.float32)
    adj_pf = (jax.random.uniform(ks[1], (P, F)) < 0.1).astype(jnp.float32)
    adj_pc = (jax.random.uniform(ks[2], (P, C)) < 0.1).astype(jnp.float32)

    def normalize(x, axis):
        return x / jnp.sum(x, axis=axis, keepdims=True)

    # Deterministic synthetic CPTs (conditional probability tables) and priors.
    cpt_auth = normalize(jax.random.uniform(ks[3], (T, I, A), jnp.float32) + 0.1, axis=-1)
    cpt_cit = normalize(jax.random.uniform(ks[4], (T, C), jnp.float32) + 0.1, axis=-1)
    cpt_fld = normalize(jax.random.uniform(ks[5], (T, F), jnp.float32) + 0.1, axis=-1)
    inst_prior = normalize(jax.random.uniform(ks[6], (1, I), jnp.float32) + 0.1, axis=-1)
    topic_prior = normalize(jax.random.uniform(ks[7], (1, T), jnp.float32) + 0.1, axis=-1)

    # ---- one-time "weight" prep (module __init__ analogue) ----
    # author->topic table contracted with the institute prior, pre-transposed to
    # [A, T]; all three child tables packed into ONE narrow [384, 128] bf16 RHS
    # (topics in lanes 0:8 of each 128-row block); topic prior folded into the
    # citation block (constant folding, paper-independent).
    m_auth_at = jnp.einsum('tia,i->at', cpt_auth, inst_prior[0])          # [A, T]
    rhs = jnp.zeros((KTOT, LANES), jnp.float32)
    rhs = rhs.at[0:A, 0:T].set(m_auth_at)
    rhs = rhs.at[A:A + C, 0:T].set(cpt_cit.T * topic_prior[0])
    rhs = rhs.at[A + C:, 0:T].set(cpt_fld.T)
    rhs_bf16 = rhs.astype(jnp.bfloat16)

    # paper incidence for the three children, concatenated along lanes and padded
    # to 16 sublanes (pad rows are all-zero -> d=1, they simply carry paper-9's state).
    adj_cat = jnp.concatenate([adj_pa, adj_pc, adj_pf], axis=-1)          # [P, 384]
    adj_cat_pad = jnp.zeros((PPAD, KTOT), jnp.float32).at[:P].set(adj_cat)

    beliefs, pred = belief_propagation(adj_cat_pad, rhs_bf16)
    beliefs = jax.block_until_ready(beliefs)
    pred = jax.block_until_ready(pred)

    # ---- pure-JAX reference of the full fused forward path ----
    def lik_seq(rows):
        lik = jnp.ones((rows.shape[1],), jnp.float32)
        out = []
        for r in rows:
            lik = lik + r
            lik = lik / jnp.sum(lik)
            out.append(lik)
        return jnp.stack(out)

    lik_a = lik_seq(adj_pa)
    lik_c = lik_seq(adj_pc)
    lik_f = lik_seq(adj_pf)
    msg_auth_ref = lik_a @ m_auth_at
    msg_cit_ref = lik_c @ cpt_cit.T
    msg_fld_ref = lik_f @ cpt_fld.T
    un_ref = msg_auth_ref * msg_cit_ref * msg_fld_ref * topic_prior
    beliefs_ref = un_ref / jnp.sum(un_ref, axis=-1, keepdims=True)

    assert beliefs.shape == (P, T) and pred.shape == (P,)
    # bf16 matmul operands + approx reciprocal + log/exp prefix -> relaxed tolerance.
    assert jnp.allclose(beliefs, beliefs_ref, atol=2e-2, rtol=2e-2), \
        float(jnp.max(jnp.abs(beliefs - beliefs_ref)))
    # in-kernel argmax must match argmax over the kernel's own beliefs exactly.
    assert bool(jnp.all(pred == jnp.argmax(beliefs, axis=-1)))
    assert bool(jnp.all(jnp.abs(jnp.sum(beliefs, axis=-1) - 1.0) < 1e-2))

    # TODO(synk): author.message_to_parent(institute) is evaluated in the original
    # forward but its result is discarded (never affects `pred`), so it is omitted.
    print("KERNEL_OK")
</pallas_src>

<mosaic_0001>
module attributes {stable_mosaic.version = 11 : i64} {
  func.func @bp_kernel(%arg0: memref<16x384xf32, #tpu.memory_space<vmem>>, %arg1: memref<384x128xbf16, #tpu.memory_space<vmem>>, %arg2: memref<16x128xf32, #tpu.memory_space<vmem>>, %arg3: memref<16x128xi32, #tpu.memory_space<vmem>>) attributes {dimension_semantics = [], scalar_prefetch = 0 : i64, scratch_operands = 0 : i64, tpu.core_type = #tpu.core_type<tc>} {
    %c0 = arith.constant 0 : index
    %c0_0 = arith.constant 0 : index
    %0 = vector.load %arg0[%c0, %c0_0] : memref<16x384xf32, #tpu.memory_space<vmem>>, vector<16x384xf32>
    %1 = vector.extract_strided_slice %0 {offsets = [0, 0], sizes = [16, 128], strides = [1, 1]} : vector<16x384xf32> to vector<16x128xf32>
    %cst = arith.constant dense<0.000000e+00> : vector<16xf32>
    %2 = vector.multi_reduction <add>, %1, %cst [1] : vector<16x128xf32> to vector<16xf32>
    %3 = vector.shape_cast %2 : vector<16xf32> to vector<16x1xf32>
    %4 = vector.extract_strided_slice %0 {offsets = [0, 128], sizes = [16, 128], strides = [1, 1]} : vector<16x384xf32> to vector<16x128xf32>
    %cst_1 = arith.constant dense<0.000000e+00> : vector<16xf32>
    %5 = vector.multi_reduction <add>, %4, %cst_1 [1] : vector<16x128xf32> to vector<16xf32>
    %6 = vector.shape_cast %5 : vector<16xf32> to vector<16x1xf32>
    %7 = vector.extract_strided_slice %0 {offsets = [0, 256], sizes = [16, 128], strides = [1, 1]} : vector<16x384xf32> to vector<16x128xf32>
    %cst_2 = arith.constant dense<0.000000e+00> : vector<16xf32>
    %8 = vector.multi_reduction <add>, %7, %cst_2 [1] : vector<16x128xf32> to vector<16xf32>
    %9 = vector.shape_cast %8 : vector<16xf32> to vector<16x1xf32>
    %10 = vector.shape_cast %3 : vector<16x1xf32> to vector<16x1xf32>
    %11 = vector.broadcast %10 : vector<16x1xf32> to vector<16x128xf32>
    %12 = vector.shape_cast %6 : vector<16x1xf32> to vector<16x1xf32>
    %13 = vector.broadcast %12 : vector<16x1xf32> to vector<16x128xf32>
    %14 = vector.shape_cast %9 : vector<16x1xf32> to vector<16x1xf32>
    %15 = vector.broadcast %14 : vector<16x1xf32> to vector<16x128xf32>
    %16 = tpu.concatenate %11, %13, %15 in 1 : vector<16x128xf32>, vector<16x128xf32>, vector<16x128xf32> -> vector<16x384xf32>
    %17 = tpu.iota {dimensions = array<i32: 0>} : vector<16x384xi32>
    %c0_i32 = arith.constant 0 : i32
    %18 = vector.broadcast %c0_i32 : i32 to vector<16x384xi32>
    %19 = arith.cmpi eq, %17, %18 : vector<16x384xi32>
    %cst_3 = arith.constant 1.280000e+02 : f32
    %cst_4 = arith.constant 1.000000e+00 : f32
    %20 = vector.broadcast %cst_3 : f32 to vector<16x384xf32>
    %21 = vector.broadcast %cst_4 : f32 to vector<16x384xf32>
    %22 = arith.select %19, %20, %21 : vector<16x384xi1>, vector<16x384xf32>
    %23 = arith.addf %16, %22 : vector<16x384xf32>
    %24 = math.log %23 : vector<16x384xf32>
    %25 = tpu.iota {dimensions = array<i32: 0>} : vector<16x16xi32>
    %26 = tpu.iota {dimensions = array<i32: 1>} : vector<16x16xi32>
    %27 = arith.cmpi sge, %25, %26 : vector<16x16xi32>
    %28 = arith.extui %27 : vector<16x16xi1> to vector<16x16xi32>
    %29 = arith.sitofp %28 : vector<16x16xi32> to vector<16x16xf32>
    %cst_5 = arith.constant dense<0.000000e+00> : vector<16x384xf32>
    %30 = tpu.matmul %29, %24, %cst_5 {dimension_numbers = #tpu.dot_dimension_numbers<[1], [0], [0], [1], [0, 0, 1, 1], [], []>} : vector<16x16xf32>, vector<16x384xf32>, vector<16x384xf32> -> vector<16x384xf32>
    %31 = arith.subf %30, %24 : vector<16x384xf32>
    %32 = math.exp %31 : vector<16x384xf32>
    %cst_6 = arith.constant 0.000000e+00 : f32
    %33 = vector.broadcast %cst_6 : f32 to vector<16x384xf32>
    %34 = arith.subf %33, %30 : vector<16x384xf32>
    %35 = math.exp %34 : vector<16x384xf32>
    %36 = arith.mulf %0, %32 : vector<16x384xf32>
    %cst_7 = arith.constant dense<0.000000e+00> : vector<16x384xf32>
    %37 = tpu.matmul %29, %36, %cst_7 {dimension_numbers = #tpu.dot_dimension_numbers<[1], [0], [0], [1], [0, 0, 1, 1], [], []>} : vector<16x16xf32>, vector<16x384xf32>, vector<16x384xf32> -> vector<16x384xf32>
    %cst_8 = arith.constant 1.000000e+00 : f32
    %38 = vector.broadcast %cst_8 : f32 to vector<16x384xf32>
    %39 = arith.addf %38, %37 : vector<16x384xf32>
    %40 = arith.mulf %39, %35 : vector<16x384xf32>
    %41 = arith.truncf %40 : vector<16x384xf32> to vector<16x384xbf16>
    %c0_9 = arith.constant 0 : index
    %c0_10 = arith.constant 0 : index
    %42 = vector.load %arg1[%c0_9, %c0_10] : memref<384x128xbf16, #tpu.memory_space<vmem>>, vector<384x128xbf16>
    %43 = vector.extract_strided_slice %41 {offsets = [0, 0], sizes = [16, 128], strides = [1, 1]} : vector<16x384xbf16> to vector<16x128xbf16>
    %44 = vector.extract_strided_slice %42 {offsets = [0, 0], sizes = [128, 128], strides = [1, 1]} : vector<384x128xbf16> to vector<128x128xbf16>
    %cst_11 = arith.constant dense<0.000000e+00> : vector<16x128xf32>
    %45 = tpu.matmul %43, %44, %cst_11 {dimension_numbers = #tpu.dot_dimension_numbers<[1], [0], [0], [1], [0, 0, 1, 1], [], []>} : vector<16x128xbf16>, vector<128x128xbf16>, vector<16x128xf32> -> vector<16x128xf32>
    %46 = vector.extract_strided_slice %41 {offsets = [0, 128], sizes = [16, 128], strides = [1, 1]} : vector<16x384xbf16> to vector<16x128xbf16>
    %47 = vector.extract_strided_slice %42 {offsets = [128, 0], sizes = [128, 128], strides = [1, 1]} : vector<384x128xbf16> to vector<128x128xbf16>
    %cst_12 = arith.constant dense<0.000000e+00> : vector<16x128xf32>
    %48 = tpu.matmul %46, %47, %cst_12 {dimension_numbers = #tpu.dot_dimension_numbers<[1], [0], [0], [1], [0, 0, 1, 1], [], []>} : vector<16x128xbf16>, vector<128x128xbf16>, vector<16x128xf32> -> vector<16x128xf32>
    %49 = vector.extract_strided_slice %41 {offsets = [0, 256], sizes = [16, 128], strides = [1, 1]} : vector<16x384xbf16> to vector<16x128xbf16>
    %50 = vector.extract_strided_slice %42 {offsets = [256, 0], sizes = [128, 128], strides = [1, 1]} : vector<384x128xbf16> to vector<128x128xbf16>
    %cst_13 = arith.constant dense<0.000000e+00> : vector<16x128xf32>
    %51 = tpu.matmul %49, %50, %cst_13 {dimension_numbers = #tpu.dot_dimension_numbers<[1], [0], [0], [1], [0, 0, 1, 1], [], []>} : vector<16x128xbf16>, vector<128x128xbf16>, vector<16x128xf32> -> vector<16x128xf32>
    %52 = arith.mulf %45, %48 : vector<16x128xf32>
    %53 = arith.mulf %52, %51 : vector<16x128xf32>
    %cst_14 = arith.constant dense<0.000000e+00> : vector<16xf32>
    %54 = vector.multi_reduction <add>, %53, %cst_14 [1] : vector<16x128xf32> to vector<16xf32>
    %55 = vector.shape_cast %54 : vector<16xf32> to vector<16x1xf32>
    %56 = tpu.reciprocal %55 {approx = true} : vector<16x1xf32> -> vector<16x1xf32>
    %57 = vector.broadcast %56 : vector<16x1xf32> to vector<16x128xf32>
    %58 = arith.mulf %53, %57 : vector<16x128xf32>
    %c0_15 = arith.constant 0 : index
    %c0_16 = arith.constant 0 : index
    %59 = vector.load %arg2[%c0_15, %c0_16] : memref<16x128xf32, #tpu.memory_space<vmem>>, vector<16x128xf32>
    tpu.vector_store %arg2[%c0_15, %c0_16], %58 {strides = array<i32>} : memref<16x128xf32, #tpu.memory_space<vmem>>, vector<16x128xf32>,
    %60 = tpu.iota {dimensions = array<i32: 1>} : vector<16x128xi32>
    %cst_17 = arith.constant dense<0xFF800000> : vector<16xf32>
    %61 = vector.multi_reduction <maximumf>, %58, %cst_17 [1] : vector<16x128xf32> to vector<16xf32>
    %62 = vector.shape_cast %61 : vector<16xf32> to vector<16x1xf32>
    %63 = vector.broadcast %62 : vector<16x1xf32> to vector<16x128xf32>
    %64 = arith.cmpf oeq, %58, %63 : vector<16x128xf32>
    %c128_i32 = arith.constant 128 : i32
    %65 = vector.broadcast %c128_i32 : i32 to vector<16x128xi32>
    %66 = arith.select %64, %60, %65 : vector<16x128xi1>, vector<16x128xi32>
    %cst_18 = arith.constant dense<2147483647> : vector<16xi32>
    %67 = vector.multi_reduction <minsi>, %66, %cst_18 [1] : vector<16x128xi32> to vector<16xi32>
    %68 = vector.shape_cast %67 : vector<16xi32> to vector<16x1xi32>
    %69 = vector.shape_cast %68 : vector<16x1xi32> to vector<16x1xi32>
    %70 = vector.broadcast %69 : vector<16x1xi32> to vector<16x128xi32>
    %c0_19 = arith.constant 0 : index
    %c0_20 = arith.constant 0 : index
    %71 = vector.load %arg3[%c0_19, %c0_20] : memref<16x128xi32, #tpu.memory_space<vmem>>, vector<16x128xi32>
    tpu.vector_store %arg3[%c0_19, %c0_20], %70 {strides = array<i32>} : memref<16x128xi32, #tpu.memory_space<vmem>>, vector<16x128xi32>,
    return
  }
}

</mosaic_0001>

<bundles_post_ra>
// kernel: belief_propagation.1
= control target key start
LH: loop header
LB: loop body
LE: loop exit
PB: predicated region body
PF: predicated region fallthrough
CT: control target
= control target key end

     0   :  { %9 = vsyncpa [#allocation3], 0  ;;  %s959_s0 = inlined_call_operand.hbm [shape: f32[16,384], index: 0, kind: input, shape index: {}]   ;;  %s960_s1 = inlined_call_operand.hbm [shape: bf16[384,128], index: 1, kind: input, shape index: {}]   ;;  %s961_s2 = inlined_call_operand.vmem [shape: f32[16,128], index: 2, kind: output, shape index: {0}]   ;;  %s962_s3 = inlined_call_operand.vmem [shape: s32[16,128], index: 3, kind: output, shape index: {1}]  }
   0x1   :  { %s15_s14 = sshll.u32 %s959_s0, 4  ;;  %s16_s14 = int_to_ptr.hbm [resolvable:$true] %s15_s14 }
   0x2   :  { %10 = vsyncpa [#allocation5], 0  ;;  %s839_s15 = smov [#allocation2]   ;;  %s28_s19 = sshll.u32 %s960_s1, 4  ;;  %s29_s19 = int_to_ptr.hbm [resolvable:$true] %s28_s19 }
   0x3   :  { %s17_s16 = sshll.u32 %s839_s15, 4  ;;  %s840_s20 = smov 384   ;;  %s18_s16 = int_to_ptr.vmem [resolvable:$true] %s17_s16 }
   0x4   :  { %s841_s21 = smov 24   ;;  %s842_s22 = smov [#allocation4]  }
   0x5   :  { %23 = dma.hbm_to_vmem [thread:$0]  %s16_s14, 768, %s18_s16, [#allocation3], %s840_s20, %s840_s20, %s841_s21  }
   0x6   :  { %s30_s23 = sshll.u32 %s842_s22, 4  ;;  %s843_s24 = smov 64   ;;  %s31_s23 = int_to_ptr.vmem [resolvable:$true] %s30_s23 }
   0x7   :  { %s844_s25 = smov 4  }
   0x8   :  { %36 = dma.hbm_to_vmem [thread:$0]  %s29_s19, 3072, %s31_s23, [#allocation5], %s843_s24, %s843_s24, %s844_s25  }
   0x9   :  { %835 = dma.done.wait [#allocation3], 768  }
   0xa   :  { %836 = vsyncadd [#allocation3], 4294966528 }
   0xb   :  { %837 = dma.done.wait [#allocation5], 3072  }
   0xc   :  { %838 = vsyncadd [#allocation5], 4294964224  ;;  %v873_v0 = vld [vmem:[#allocation2 + $0x28] sm:$0xff]  ;;  %v875_v1 = vld [vmem:[#allocation2 + $0x18] sm:$0xff]  ;;  %v63_v6 = vlaneseq  ;;  %v845_v13 = vmov 1.0   ;;  %v846_v31 = vmov 0.0  }
   0xd   :  { %61 = vadd.xlane.f32.xlu2 %v873_v0  ;;  %53 = vadd.xlane.f32.xlu0 %v875_v1  ;;  %v879_v2 = vld [vmem:[#allocation2 + $0x20] sm:$0xff]  ;;  %v882_v3 = vld [vmem:[#allocation2 + $0x10] sm:$0xff]  ;;  %v886_v5 = vld [vmem:[#allocation2 + $0x8] sm:$0xff]  ;;  %vm96_vm2 = vcmask 130048  }
   0xe   :  { %57 = vadd.xlane.f32.xlu1 %v879_v2  ;;  %v884_v4 = vld [vmem:[#allocation2] sm:$0xff]  ;;  %v64_v7 = vshrl.u32 %v63_v6, 7  ;;  %v891_v25 = vand.u32 127, %v63_v6  ;;  %v722_v53 = vld [vmem:[#allocation4 + $0x38] sm:$0xff] }
   0xf   :  { %v730_v58 = vld [vmem:[#allocation4 + $0x78] sm:$0xff] }
  0x10   :  { %vm66_vm0 = vcmp.eq.s32.totalorder %v64_v7, 0  ;;  %vm90_vm1 = vcmp.ge.s32.totalorder %v64_v7, %v891_v25  ;;  %v65_v36 = vadd.s32 8, %v64_v7 }
  0x11   :  { %v68_v14 = vsel %vm66_vm0, 128.0, %v845_v13  ;;  %v894_v32 = vsel %vm90_vm1, 1.0, %v846_v31  ;;  %v729_v13 = vld [vmem:[#allocation4 + $0x70] sm:$0xff] }
  0x12   :  { %vm91_vm3 = vcmp.ge.s32.totalorder %v65_v36, %v891_v25 }
  0x13   :  { %v606_v38 = vsel %vm91_vm3, 1.0, %v846_v31 }
  0x15   :  { %59 = vadd.xlane.f32.xlu2 %v882_v3  ;;  %51 = vadd.xlane.f32.xlu0 %v884_v4 }
  0x16   :  { %55 = vadd.xlane.f32.xlu1 %v886_v5 }
  0x80   :  { %v62_v8 = vpop.xlane.xlu2 %61  ;;  %v54_v9 = vpop.xlane.xlu0 %53 }
  0x81   :  { %v75_v10 = vadd.f32 1.0, %v62_v8  ;;  %v73_v11 = vadd.f32 1.0, %v54_v9  ;;  %v58_v12 = vpop.xlane.xlu1 %57 }
  0x82   :  { %v74_v15 = vadd.f32 1.0, %v58_v12  ;;  %v735_v12 = vld [vmem:[#allocation4 + $0xa0] sm:$0xff] }
  0x83   :  { %747 = vlog2.f32 %v75_v10  ;;  %v738_v10 = vld [vmem:[#allocation4 + $0xb8] sm:$0xff] }
  0x84   :  { %749 = vlog2.f32 %v73_v11  ;;  %v736_v11 = vld [vmem:[#allocation4 + $0xa8] sm:$0xff] }
  0x85   :  { %751 = vlog2.f32 %v74_v15  ;;  %v728_v15 = vld [vmem:[#allocation4 + $0x68] sm:$0xff] }
  0x88   :  { %v60_v16 = vpop.xlane.xlu2 %59  ;;  %v52_v17 = vpop.xlane.xlu0 %51 }
  0x89   :  { %v748_v18 = vpop.eup %747  ;;  %v72_v19 = vadd.f32 %v68_v14, %v60_v16  ;;  %v70_v20 = vadd.f32 %v68_v14, %v52_v17  ;;  %v56_v21 = vpop.xlane.xlu1 %55  ;;  %v733_v16 = vld [vmem:[#allocation4 + $0x90] sm:$0xff]  ;;  %v719_v17 = vld [vmem:[#allocation4 + $0x20] sm:$0xff] }
  0x8a   :  { %v750_v22 = vpop.eup %749  ;;  %v87_v23 = vmul.f32 0.6931472, %v748_v18  ;;  %v71_v24 = vadd.f32 %v68_v14, %v56_v21  ;;  %v734_v14 = vld [vmem:[#allocation4 + $0x98] sm:$0xff]  ;;  %v727_v18 = vld [vmem:[#allocation4 + $0x60] sm:$0xff] }
  0x8b   :  { %753 = vlog2.f32 %v72_v19  ;;  %v83_v26 = vmul.f32 0.6931472, %v750_v22  ;;  %v752_v27 = vpop.eup %751  ;;  %v732_v19 = vld [vmem:[#allocation4 + $0x88] sm:$0xff]  ;;  %v726_v21 = vld [vmem:[#allocation4 + $0x58] sm:$0xff]  ;;  %v731_v22 = vld [vmem:[#allocation4 + $0x80] sm:$0xff] }
  0x8c   :  { %755 = vlog2.f32 %v70_v20  ;;  %163 = vmatpush.msra.mxu2 %v87_v23  ;;  %v85_v35 = vmul.f32 0.6931472, %v752_v27  ;;  %v718_v20 = vld [vmem:[#allocation4 + $0x18] sm:$0xff]  ;;  %v724_v27 = vld [vmem:[#allocation4 + $0x48] sm:$0xff] }
  0x8d   :  { %117 = vmatpush.msra.mxu1 %v83_v26  ;;  %757 = vlog2.f32 %v71_v24  ;;  %v725_v24 = vld [vmem:[#allocation4 + $0x50] sm:$0xff] }
  0x91   :  { %v754_v28 = vpop.eup %753 }
  0x92   :  { %v756_v29 = vpop.eup %755  ;;  %v81_v30 = vmul.f32 0.6931472, %v754_v28 }
  0x93   :  { %v758_v33 = vpop.eup %757  ;;  %v77_v34 = vmul.f32 0.6931472, %v756_v29  ;;  %v715_v29 = vld [vmem:[#allocation4] sm:$0xff] }
  0x94   :  { %164 = vmatpush.msra.mxu2 %v81_v30  ;;  %v79_v37 = vmul.f32 0.6931472, %v758_v33 }
  0x95   :  { %118 = vmatpush.msra.mxu1 %v77_v34  ;;  %611 = vmatmul.msk.f32.vlgmr.msra.gmra.mxu2 %vm96_vm2, %v894_v32 }
  0x96   :  { %607 = vmatmul.msk.f32.vlgmr.msra.gmra.mxu1 %vm96_vm2, %v894_v32  ;;  %395 = vmatpush.bf16.msrb.mxu2 %v722_v53 }
  0x97   :  { %140 = vmatpush.msrb.mxu1 %v85_v35 }
  0x99   :  { %141 = vmatpush.msrb.mxu1 %v79_v37 }
  0x9d   :  { %612 = vmatmul.msk.f32.gmra.mxu2 %vm96_vm2, %v606_v38 }
  0x9e   :  { %608 = vmatmul.msk.f32.gmra.mxu1 %vm96_vm2, %v606_v38 }
  0xa6   :  { %609 = vmatmul.msk.f32.vlgmr.msrb.gmra.mxu1 %vm96_vm2, %v894_v32 }
  0xae   :  { %610 = vmatmul.msk.f32.gmra.mxu1 %vm96_vm2, %v606_v38 }
 0x113   :  { %v906_v39 = vpop.f32.mrf.mxu1 }
 0x114   :  { %v172_v40 = vsub.f32 %v906_v39, %v77_v34  ;;  %v190_v33 = vsub.f32 0.0, %v906_v39 }
 0x116   :  { %v178_v42 = vmul.f32 1.442695, %v172_v40 }
 0x118   :  { %v909_v41 = vpop.f32.mrf.mxu2  ;;  %759 = vpow2.f32 %v178_v42 }
 0x119   :  { %v174_v44 = vsub.f32 %v909_v41, %v81_v30  ;;  %v192_v28 = vsub.f32 0.0, %v909_v41  ;;  %v723_v30 = vld [vmem:[#allocation4 + $0x40] sm:$0xff] }
 0x11b   :  { %v911_v43 = vpop.f32.mrf.mxu1  ;;  %v182_v47 = vmul.f32 1.442695, %v174_v44  ;;  %v200_v31 = vmul.f32 1.442695, %v192_v28 }
 0x11c   :  { %v175_v45 = vsub.f32 %v911_v43, %v83_v26  ;;  %v716_v26 = vld [vmem:[#allocation4 + $0x8] sm:$0xff]  ;;  %v193_v44 = vsub.f32 0.0, %v911_v43 }
 0x11e   :  { %v184_v46 = vmul.f32 1.442695, %v175_v45  ;;  %v760_v52 = vpop.eup %759 }
 0x11f   :  { %v208_v57 = vmul.f32 %v760_v52, %v884_v4 }
 0x120   :  { %761 = vpow2.f32 %v184_v46  ;;  %v915_v48 = vpop.f32.mrf.mxu2 }
 0x121   :  { %v177_v49 = vsub.f32 %v915_v48, %v87_v23  ;;  %763 = vpow2.f32 %v182_v47  ;;  %v717_v23 = vld [vmem:[#allocation4 + $0x10] sm:$0xff] }
 0x123   :  { %v188_v50 = vmul.f32 1.442695, %v177_v49  ;;  %v918_v51 = vpop.f32.mrf.mxu1  ;;  %v202_v49 = vmul.f32 1.442695, %v193_v44 }
 0x124   :  { %v173_v55 = vsub.f32 %v918_v51, %v79_v37  ;;  %v191_v34 = vsub.f32 0.0, %v918_v51  ;;  %v196_v37 = vmul.f32 1.442695, %v190_v33 }
 0x125   :  { %765 = vpow2.f32 %v188_v50 }
 0x126   :  { %v762_v54 = vpop.eup %761  ;;  %v180_v61 = vmul.f32 1.442695, %v173_v55 }
 0x127   :  { %v211_v56 = vmul.f32 %v762_v54, %v875_v1  ;;  %v764_v59 = vpop.eup %763 }
 0x128   :  { %v210_v7 = vmul.f32 %v764_v59, %v882_v3  ;;  %767 = vpow2.f32 %v180_v61  ;;  %v737_v3 = vld [vmem:[#allocation4 + $0xb0] sm:$0xff] }
 0x129   :  { %228 = vmatpush.msra.mxu3 %v211_v56 }
 0x12b   :  { %v766_v60 = vpop.eup %765  ;;  %v923_v62 = vpop.f32.mrf.mxu1  ;;  %229 = vmatpush.msra.mxu3 %v208_v57 }
 0x12c   :  { %v176_v63 = vsub.f32 %v923_v62, %v85_v35  ;;  %613 = vmatmul.msk.f32.vlgmr.msra.gmra.mxu3 %vm96_vm2, %v894_v32  ;;  %v213_v6 = vmul.f32 %v766_v60, %v873_v0  ;;  %v194_v45 = vsub.f32 0.0, %v923_v62 }
 0x12d   :  { %461 = vmatpush.bf16.msrb.mxu3 %v730_v58 }
 0x12e   :  { %v186_v1 = vmul.f32 1.442695, %v176_v63  ;;  %274 = vmatpush.msra.mxu1 %v213_v6  ;;  %v768_v4 = vpop.eup %767  ;;  %v204_v51 = vmul.f32 1.442695, %v194_v45 }
 0x12f   :  { %v209_v0 = vmul.f32 %v768_v4, %v886_v5  ;;  %v720_v5 = vld [vmem:[#allocation4 + $0x28] sm:$0xff] }
 0x130   :  { %769 = vpow2.f32 %v186_v1  ;;  %275 = vmatpush.msra.mxu1 %v210_v7 }
 0x131   :  { %617 = vmatmul.msk.f32.vlgmr.msra.gmra.mxu1 %vm96_vm2, %v894_v32  ;;  %462 = vmatpush.bf16.msrb.mxu3 %v729_v13  ;;  %771 = vpow2.f32 %v200_v31 }
 0x134   :  { %614 = vmatmul.msk.f32.gmra.mxu3 %vm96_vm2, %v606_v38 }
 0x135   :  { %463 = vmatpush.bf16.msrb.mxu3 %v728_v15 }
 0x136   :  { %v770_v8 = vpop.eup %769 }
 0x137   :  { %v212_v9 = vmul.f32 %v770_v8, %v879_v2  ;;  %v721_v2 = vld [vmem:[#allocation4 + $0x30] sm:$0xff]  ;;  %v772_v42 = vpop.eup %771 }
 0x138   :  { %396 = vmatpush.bf16.msrb.mxu2 %v721_v2 }
 0x139   :  { %251 = vmatpush.msra.mxu0 %v212_v9  ;;  %618 = vmatmul.msk.f32.gmra.mxu1 %vm96_vm2, %v606_v38 }
 0x13a   :  { %464 = vmatpush.bf16.msrb.mxu3 %v727_v18 }
 0x13b   :  { %252 = vmatpush.msra.mxu0 %v209_v0 }
 0x13c   :  { %615 = vmatmul.msk.f32.vlgmr.msra.gmra.mxu0 %vm96_vm2, %v894_v32  ;;  %397 = vmatpush.bf16.msrb.mxu2 %v720_v5  ;;  %v195_v32 = vsub.f32 0.0, %v915_v48 }
 0x13d   :  { %529 = vmatpush.bf16.msrb.mxu0 %v738_v10 }
 0x13e   :  { %465 = vmatpush.bf16.msrb.mxu3 %v726_v21  ;;  %v206_v35 = vmul.f32 1.442695, %v195_v32 }
 0x140   :  { %398 = vmatpush.bf16.msrb.mxu2 %v719_v17  ;;  %773 = vpow2.f32 %v206_v35 }
 0x141   :  { %530 = vmatpush.bf16.msrb.mxu0 %v737_v3  ;;  %775 = vpow2.f32 %v196_v37 }
 0x142   :  { %466 = vmatpush.bf16.msrb.mxu3 %v725_v24 }
 0x144   :  { %616 = vmatmul.msk.f32.gmra.mxu0 %vm96_vm2, %v606_v38  ;;  %399 = vmatpush.bf16.msrb.mxu2 %v718_v20  ;;  %v198_v38 = vmul.f32 1.442695, %v191_v34 }
 0x145   :  { %531 = vmatpush.bf16.msrb.mxu0 %v736_v11 }
 0x146   :  { %467 = vmatpush.bf16.msrb.mxu3 %v724_v27  ;;  %777 = vpow2.f32 %v198_v38  ;;  %v774_v48 = vpop.eup %773 }
 0x147   :  { %v776_v55 = vpop.eup %775  ;;  %779 = vpow2.f32 %v202_v49 }
 0x148   :  { %400 = vmatpush.bf16.msrb.mxu2 %v717_v23  ;;  %781 = vpow2.f32 %v204_v51 }
 0x149   :  { %532 = vmatpush.bf16.msrb.mxu0 %v735_v12 }
 0x14a   :  { %468 = vmatpush.bf16.msrb.mxu3 %v723_v30 }
 0x14c   :  { %401 = vmatpush.bf16.msrb.mxu2 %v716_v26  ;;  %v778_v57 = vpop.eup %777 }
 0x14d   :  { %533 = vmatpush.bf16.msrb.mxu0 %v734_v14  ;;  %v780_v4 = vpop.eup %779 }
 0x14e   :  { %v782_v9 = vpop.eup %781 }
 0x150   :  { %402 = vmatpush.bf16.msrb.mxu2 %v715_v29 }
 0x151   :  { %534 = vmatpush.bf16.msrb.mxu0 %v733_v16 }
 0x155   :  { %535 = vmatpush.bf16.msrb.mxu0 %v732_v19 }
 0x159   :  { %536 = vmatpush.bf16.msrb.mxu0 %v731_v22 }
 0x1ae   :  { %v277_v36 = vpop.f32.mrf.mxu1 }
 0x1af   :  { %v278_v40 = vadd.f32 1.0, %v277_v36  ;;  %v231_v41 = vpop.f32.mrf.mxu3 }
 0x1b0   :  { %v232_v50 = vadd.f32 1.0, %v231_v41 }
 0x1b1   :  { %v285_v46 = vmul.f32 %v772_v42, %v278_v40 }
 0x1b2   :  { %v283_v59 = vmul.f32 %v776_v55, %v232_v50 }
 0x1b3   :  { %v290_v52 = vpack.c.bf16 %v285_v46, %v285_v46 }
 0x1b5   :  { %v477_v60 = vunpack.c.l.b16 %v290_v52 }
 0x1b6   :  { %v280_v47 = vpop.f32.mrf.mxu1 }
 0x1b7   :  { %v281_v39 = vadd.f32 1.0, %v280_v47  ;;  %v234_v61 = vpop.f32.mrf.mxu3 }
 0x1b8   :  { %v235_v1 = vadd.f32 1.0, %v234_v61 }
 0x1b9   :  { %v288_v53 = vmul.f32 %v774_v48, %v281_v39  ;;  %v254_v54 = vpop.f32.mrf.mxu0 }
 0x1ba   :  { %v255_v56 = vadd.f32 1.0, %v254_v54  ;;  %v286_v0 = vmul.f32 %v780_v4, %v235_v1 }
 0x1bb   :  { %v292_v58 = vpack.c.bf16 %v288_v53, %v288_v53 }
 0x1bc   :  { %v284_v43 = vmul.f32 %v778_v57, %v255_v56 }
 0x1bd   :  { %v478_v62 = vunpack.c.l.b16 %v292_v58 }
 0x1be   :  { %v289_v63 = vpack.c.bf16 %v284_v43, %v283_v59 }
 0x1bf   :  { %v479_v6 = vpack.c.b16 %v478_v62, %v477_v60 }
 0x1c0   :  { %v343_v11 = vunpack.c.l.b16 %v289_v63  ;;  %v409_v2 = vunpack.c.h.b16 %v289_v63 }
 0x1c1   :  { %v257_v7 = vpop.f32.mrf.mxu0  ;;  %537 = vmatmul.bf16.vlgmr.msrb.gmra.mxu0 %v479_v6 }
 0x1c2   :  { %v258_v8 = vadd.f32 1.0, %v257_v7 }
 0x1c4   :  { %v287_v10 = vmul.f32 %v782_v9, %v258_v8 }
 0x1c6   :  { %v291_v3 = vpack.c.bf16 %v287_v10, %v286_v0 }
 0x1c8   :  { %v344_v12 = vunpack.c.l.b16 %v291_v3  ;;  %v410_v13 = vunpack.c.h.b16 %v291_v3 }
 0x1ca   :  { %v345_v14 = vpack.c.b16 %v344_v12, %v343_v11  ;;  %v411_v5 = vpack.c.b16 %v410_v13, %v409_v2 }
 0x1cc   :  { %403 = vmatmul.bf16.vlgmr.msrb.gmra.mxu2 %v345_v14  ;;  %469 = vmatmul.bf16.vlgmr.msrb.gmra.mxu3 %v411_v5 }
 0x23e   :  { %v538_v15 = vpop.f32.mrf.mxu0 }
 0x246   :  { %v540_v23 = vpop.f32.mrf.mxu0 }
 0x24f   :  { %v404_v16 = vpop.f32.mrf.mxu2  ;;  %v470_v17 = vpop.f32.mrf.mxu3 }
 0x250   :  { %v543_v18 = vmul.f32 %v470_v17, %v404_v16 }
 0x252   :  { %v545_v19 = vmul.f32 %v543_v18, %v538_v15 }
 0x254   :  { %547 = vadd.xlane.f32.xlu0 %v545_v19 }
 0x257   :  { %v406_v20 = vpop.f32.mrf.mxu2  ;;  %v472_v21 = vpop.f32.mrf.mxu3 }
 0x258   :  { %v544_v22 = vmul.f32 %v472_v21, %v406_v20 }
 0x25a   :  { %v546_v24 = vmul.f32 %v544_v22, %v540_v23 }
 0x25c   :  { %549 = vadd.xlane.f32.xlu1 %v546_v24 }
 0x2c7   :  { %v548_v26 = vpop.xlane.xlu0 %547 }
 0x2c8   :  { %783 = vrcp.f32 %v548_v26 }
 0x2ce   :  { %v784_v27 = vpop.eup %783 }
 0x2cf   :  { %v550_v28 = vpop.xlane.xlu1 %549  ;;  %v553_v29 = vmul.f32 %v784_v27, %v545_v19 }
 0x2d0   :  { %785 = vrcp.f32 %v550_v28 }
 0x2d1   :  { %557 = vmax.xlane.f32.xlu2 %v553_v29  ;;  %555 = vst [vmem:[%s961_s2] sm:$0xff] %v553_v29 }
 0x2d6   :  { %v786_v30 = vpop.eup %785 }
 0x2d7   :  { %v554_v31 = vmul.f32 %v786_v30, %v546_v24 }
 0x2d9   :  { %559 = vmax.xlane.f32.xlu0 %v554_v31  ;;  %556 = vst [vmem:[%s961_s2 + $0x8] sm:$0xff] %v554_v31 }
 0x344   :  { %v558_v32 = vpop.xlane.xlu2 %557 }
 0x345   :  { %vm561_vm4 = vcmp.eq.f32.partialorder %v553_v29, %v558_v32 }
 0x346   :  { %v563_v33 = vsel %vm561_vm4, %v891_v25, 128 }
 0x347   :  { %v566_v34 = vshra.s32 %v563_v33, 16  ;;  %v565_v41 = vand.u32 65535, %v563_v33 }
 0x349   :  { %v568_v35 = vcvt.s32.f32 %v566_v34  ;;  %v567_v44 = vcvt.s32.f32 %v565_v41 }
 0x34b   :  { %569 = vmin.xlane.f32.xlu1 %v568_v35 }
 0x34c   :  { %v560_v36 = vpop.xlane.xlu0 %559 }
 0x34d   :  { %vm562_vm5 = vcmp.eq.f32.partialorder %v554_v31, %v560_v36 }
 0x34e   :  { %v564_v37 = vsel %vm562_vm5, %v891_v25, 128 }
 0x34f   :  { %v580_v38 = vshra.s32 %v564_v37, 16  ;;  %v579_v46 = vand.u32 65535, %v564_v37 }
 0x351   :  { %v582_v40 = vcvt.s32.f32 %v580_v38  ;;  %v581_v39 = vcvt.s32.f32 %v579_v46 }
 0x353   :  { %583 = vmin.xlane.f32.xlu2 %v582_v40 }
 0x3be   :  { %v570_v42 = vpop.xlane.xlu1 %569 }
 0x3bf   :  { %vm571_vm6 = vcmp.eq.f32.partialorder %v568_v35, %v570_v42  ;;  %v576_v49 = vcvt.f32.s32 %v570_v42 }
 0x3c0   :  { %v572_v45 = vsel %vm571_vm6, %v567_v44, inf }
 0x3c1   :  { %573 = vmin.xlane.f32.xlu0 %v572_v45  ;;  %v577_v51 = vshll.u32 %v576_v49, 16 }
 0x3c6   :  { %v584_v47 = vpop.xlane.xlu2 %583 }
 0x3c7   :  { %vm585_vm7 = vcmp.eq.f32.partialorder %v582_v40, %v584_v47  ;;  %v590_v53 = vcvt.f32.s32 %v584_v47 }
 0x3c8   :  { %v586_v48 = vsel %vm585_vm7, %v581_v39, inf }
 0x3c9   :  { %587 = vmin.xlane.f32.xlu1 %v586_v48  ;;  %v591_v55 = vshll.u32 %v590_v53, 16 }
 0x434   :  { %v574_v50 = vpop.xlane.xlu0 %573 }
 0x435   :  { %v575_v52 = vcvt.f32.s32 %v574_v50 }
 0x437   :  { %v578_v25 = vadd.s32 %v577_v51, %v575_v52 }
 0x439   :  { %593 = vst [vmem:[%s962_s3] sm:$0xff] %v578_v25 }
 0x43c   :  { %v588_v54 = vpop.xlane.xlu1 %587 }
 0x43d   :  { %v589_v56 = vcvt.f32.s32 %v588_v54 }
 0x43f   :  { %v592_v57 = vadd.s32 %v591_v55, %v589_v56 }
 0x441   :  { %594 = vst [vmem:[%s962_s3 + $0x8] sm:$0xff] %v592_v57 }
 0x442   :  { %603 = vsyncpa [#allocation3], 1 }
 0x443   :  { %604 = vsyncpa [#allocation5], 1 }

</bundles_post_ra>
